<compile_context>
chip_gen: v5e
topology: v5e:2x2
jax: 0.10.0
libtpu: 0.0.40
codegen_flags: <defaults>
</compile_context>

<pallas_src>
import functools

import jax
import jax.numpy as jnp
from jax.experimental import pallas as pl
from jax.experimental.pallas import tpu as pltpu


def _round_up(x, m):
    return ((x + m - 1) // m) * m


def _fused_multimodal_kernel(
    x_ref,        # [tm, tk]  bf16  concat(img_flat, q_flat[, knowledge]) tile
    w_ref,        # [tk, Hp]  bf16  concat(w_img, tile(w_q)/S[, w_k]) tile
    b_fused_ref,  # [1,  Hp]  f32   b_img + b_q + b_k
    w_out_ref,    # [Hp, Cp]  bf16
    b_out_ref,    # [1,  Cp]  f32
    out_ref,      # [tm, Cp]  f32
    acc_ref,      # [tm, Hp]  f32   VMEM accumulator (persists over k)
):
    k = pl.program_id(1)

    @pl.when(k == 0)
    def _():
        acc_ref[...] = jnp.zeros_like(acc_ref)

    # Fused modality projection (+ folded mean-pool) on the MXU, f32 accum.
    acc_ref[...] += jnp.dot(
        x_ref[...], w_ref[...], preferred_element_type=jnp.float32
    )

    @pl.when(k == pl.num_programs(1) - 1)
    def _():
        fused = jnp.maximum(acc_ref[...] + b_fused_ref[...], 0.0)  # bias + ReLU
        logits = jnp.dot(
            fused.astype(w_out_ref.dtype),
            w_out_ref[...],
            preferred_element_type=jnp.float32,
        ) + b_out_ref[...]
        out_ref[...] = logits.astype(out_ref.dtype)


@functools.partial(jax.jit, static_argnames=("tm", "tk"))
def multimodal_forward(image, question, knowledge, params, *, tm=8, tk=512):
    """image: [B, C, H, W] f32; question: [B, S, Dq] f32; knowledge: [B, Dk] or None."""
    compute_dtype = jnp.bfloat16

    B = image.shape[0]
    S = question.shape[1]

    img_flat = image.reshape(B, -1)      # matches torch .view(B, -1) on NCHW
    q_flat = question.reshape(B, -1)     # [B, S*Dq]

    # Fold the sequence mean-pool into the matmul:
    #   mean_s(q) @ w_q == q_flat @ (tile(w_q, S) / S)
    w_q_big = jnp.tile(params["w_q"], (S, 1)) * (1.0 / float(S))

    parts_x = [img_flat, q_flat]
    parts_w = [params["w_img"], w_q_big]
    if knowledge is not None:
        parts_x.append(knowledge)
        parts_w.append(params["w_k"])
    x = jnp.concatenate(parts_x, axis=1)     # [B, K_total]
    w = jnp.concatenate(parts_w, axis=0)     # [K_total, H]

    # Pre-summed bias.  b_k is always added, matching the original semantics
    # where knowledge=None produced zeros @ w_k + b_k.
    b_fused = (
        params["b_img"] + params["b_q"] + params["b_k"]
    ).astype(jnp.float32)
    w_out = params["w_out"]
    b_out = params["b_out"].astype(jnp.float32)

    hid = w_out.shape[0]
    cout = w_out.shape[1]
    k_total = x.shape[1]

    # Pad lane dims to 128, K to the K tile, batch to the M tile (>= 8).
    Bp = _round_up(max(B, tm), tm)
    Kp = _round_up(k_total, tk)
    Hp = _round_up(hid, 128)
    Cp = _round_up(cout, 128)

    x = jnp.pad(x, ((0, Bp - B), (0, Kp - k_total))).astype(compute_dtype)
    w = jnp.pad(w, ((0, Kp - k_total), (0, Hp - hid))).astype(compute_dtype)
    b_fused = jnp.pad(b_fused, ((0, 0), (0, Hp - hid)))
    w_out_p = jnp.pad(w_out, ((0, Hp - hid), (0, Cp - cout))).astype(compute_dtype)
    b_out_p = jnp.pad(b_out, ((0, 0), (0, Cp - cout)))

    grid = (Bp // tm, Kp // tk)

    out = pl.pallas_call(
        _fused_multimodal_kernel,
        out_shape=jax.ShapeDtypeStruct((Bp, Cp), jnp.float32),
        grid_spec=pltpu.PrefetchScalarGridSpec(
            num_scalar_prefetch=0,
            grid=grid,
            in_specs=[
                pl.BlockSpec((tm, tk), lambda i, k: (i, k)),   # x
                pl.BlockSpec((tk, Hp), lambda i, k: (k, 0)),   # w (streams over K)
                pl.BlockSpec((1, Hp), lambda i, k: (0, 0)),    # b_fused
                pl.BlockSpec((Hp, Cp), lambda i, k: (0, 0)),   # w_out
                pl.BlockSpec((1, Cp), lambda i, k: (0, 0)),    # b_out
            ],
            out_specs=pl.BlockSpec((tm, Cp), lambda i, k: (i, 0)),
            scratch_shapes=[pltpu.VMEM((tm, Hp), jnp.float32)],
        ),
        compiler_params=pltpu.CompilerParams(
            # Batch axis parallel (both TCs on v7x), K reduction arbitrary.
            dimension_semantics=("parallel", "arbitrary"),
        ),
    )(x, w, b_fused, w_out_p, b_out_p)

    return out[:B, :cout]


def _reference_forward(image, question, knowledge, params):
    """Pure-JAX f32 reference for correctness checking."""
    B = image.shape[0]
    img_flat = image.reshape(B, -1)
    q_pooled = jnp.mean(question, axis=1)
    if knowledge is None:
        knowledge = jnp.zeros((B, params["w_k"].shape[0]), jnp.float32)
    hp = jax.lax.Precision.HIGHEST
    h = (
        jnp.dot(img_flat, params["w_img"], precision=hp) + params["b_img"]
        + jnp.dot(q_pooled, params["w_q"], precision=hp) + params["b_q"]
        + jnp.dot(knowledge, params["w_k"], precision=hp) + params["b_k"]
    )
    h = jnp.maximum(h, 0.0)
    return jnp.dot(h, params["w_out"], precision=hp) + params["b_out"]


def init_params(key, din_img, dq, dk, hidden, cout):
    ks = jax.random.split(key, 8)
    scale = 0.02
    return {
        "w_img": scale * jax.random.normal(ks[0], (din_img, hidden), jnp.float32),
        "b_img": scale * jax.random.normal(ks[1], (1, hidden), jnp.float32),
        "w_q": scale * jax.random.normal(ks[2], (dq, hidden), jnp.float32),
        "b_q": scale * jax.random.normal(ks[3], (1, hidden), jnp.float32),
        "w_k": scale * jax.random.normal(ks[4], (dk, hidden), jnp.float32),
        "b_k": scale * jax.random.normal(ks[5], (1, hidden), jnp.float32),
        "w_out": scale * jax.random.normal(ks[6], (hidden, cout), jnp.float32),
        "b_out": scale * jax.random.normal(ks[7], (1, cout), jnp.float32),
    }


if __name__ == "__main__":
    # Small deterministic shapes.
    B, C, H, W = 2, 4, 16, 16
    S, DQ = 8, 32          # question: seq length 8, embed dim 32
    DK = 32                # knowledge embedding dim
    HID, COUT = 32, 16     # hidden size, number of output classes

    key = jax.random.PRNGKey(0)
    k_img, k_q, k_k, k_p = jax.random.split(key, 4)

    image = jax.random.normal(k_img, (B, C, H, W), jnp.float32)
    question = jax.random.normal(k_q, (B, S, DQ), jnp.float32)
    knowledge = jax.random.normal(k_k, (B, DK), jnp.float32)

    params = init_params(k_p, C * H * W, DQ, DK, HID, COUT)

    # Run with knowledge provided and with knowledge=None (both supported paths).
    out = jax.block_until_ready(multimodal_forward(image, question, knowledge, params))
    out_no_k = jax.block_until_ready(multimodal_forward(image, question, None, params))

    assert out.shape == (B, COUT) and out_no_k.shape == (B, COUT)
    assert jnp.all(jnp.isfinite(out)) and jnp.all(jnp.isfinite(out_no_k))

    # Loose-tolerance correctness check against an f32 JAX reference
    # (kernel computes in bf16 with f32 accumulation).
    ref = _reference_forward(image, question, knowledge, params)
    ref_no_k = _reference_forward(image, question, None, params)
    assert float(jnp.max(jnp.abs(out - ref))) < 5e-2
    assert float(jnp.max(jnp.abs(out_no_k - ref_no_k))) < 5e-2

    print("KERNEL_OK")
</pallas_src>

<mosaic_0001>
module attributes {stable_mosaic.version = 11 : i64} {
  func.func @_fused_multimodal_kernel(%arg0: i32, %arg1: i32, %arg2: memref<8x512xbf16, #tpu.memory_space<vmem>>, %arg3: memref<512x128xbf16, #tpu.memory_space<vmem>>, %arg4: memref<1x128xf32, #tpu.memory_space<vmem>>, %arg5: memref<128x128xbf16, #tpu.memory_space<vmem>>, %arg6: memref<1x128xf32, #tpu.memory_space<vmem>>, %arg7: memref<8x128xf32, #tpu.memory_space<vmem>>, %arg8: memref<8x128xf32, #tpu.memory_space<vmem>>) attributes {dimension_semantics = [#tpu.dimension_semantics<parallel>, #tpu.dimension_semantics<arbitrary>], iteration_bounds = array<i64: 1, 3>, scalar_prefetch = 0 : i64, scratch_operands = 1 : i64, tpu.core_type = #tpu.core_type<tc>, window_params = [{transform_indices = @transform_0, window_bounds = array<i64: 8, 512>}, {transform_indices = @transform_1, window_bounds = array<i64: 512, 128>}, {pipeline_mode = #tpu.pipeline_mode<synchronous>, transform_indices = @transform_2, window_bounds = array<i64: 1, 128>}, {pipeline_mode = #tpu.pipeline_mode<synchronous>, transform_indices = @transform_3, window_bounds = array<i64: 128, 128>}, {pipeline_mode = #tpu.pipeline_mode<synchronous>, transform_indices = @transform_4, window_bounds = array<i64: 1, 128>}, {transform_indices = @transform_5, window_bounds = array<i64: 8, 128>}]} {
    %c0_i32 = arith.constant 0 : i32
    %0 = arith.cmpi eq, %arg1, %c0_i32 : i32
    %1 = arith.extui %0 : i1 to i32
    %c0_i32_0 = arith.constant 0 : i32
    %2 = arith.cmpi ne, %1, %c0_i32_0 : i32
    scf.if %2 {
      %cst_9 = arith.constant 0.000000e+00 : f32
      %12 = vector.broadcast %cst_9 : f32 to vector<8x128xf32>
      %c0_10 = arith.constant 0 : index
      %c0_11 = arith.constant 0 : index
      %13 = vector.load %arg8[%c0_10, %c0_11] : memref<8x128xf32, #tpu.memory_space<vmem>>, vector<8x128xf32>
      tpu.vector_store %arg8[%c0_10, %c0_11], %12 {strides = array<i32>} : memref<8x128xf32, #tpu.memory_space<vmem>>, vector<8x128xf32>,
    } else {
    }
    %c0 = arith.constant 0 : index
    %c0_1 = arith.constant 0 : index
    %3 = vector.load %arg8[%c0, %c0_1] : memref<8x128xf32, #tpu.memory_space<vmem>>, vector<8x128xf32>
    %c0_2 = arith.constant 0 : index
    %c0_3 = arith.constant 0 : index
    %4 = vector.load %arg2[%c0_2, %c0_3] : memref<8x512xbf16, #tpu.memory_space<vmem>>, vector<8x512xbf16>
    %c0_4 = arith.constant 0 : index
    %c0_5 = arith.constant 0 : index
    %5 = vector.load %arg3[%c0_4, %c0_5] : memref<512x128xbf16, #tpu.memory_space<vmem>>, vector<512x128xbf16>
    %cst = arith.constant dense<0.000000e+00> : vector<8x128xf32>
    %6 = tpu.matmul %4, %5, %cst {dimension_numbers = #tpu.dot_dimension_numbers<[1], [0], [0], [1], [0, 0, 1, 1], [], []>} : vector<8x512xbf16>, vector<512x128xbf16>, vector<8x128xf32> -> vector<8x128xf32>
    %7 = arith.addf %3, %6 : vector<8x128xf32>
    %c0_6 = arith.constant 0 : index
    %c0_7 = arith.constant 0 : index
    %8 = vector.load %arg8[%c0_6, %c0_7] : memref<8x128xf32, #tpu.memory_space<vmem>>, vector<8x128xf32>
    tpu.vector_store %arg8[%c0_6, %c0_7], %7 {strides = array<i32>} : memref<8x128xf32, #tpu.memory_space<vmem>>, vector<8x128xf32>,
    %c2_i32 = arith.constant 2 : i32
    %9 = arith.cmpi eq, %arg1, %c2_i32 : i32
    %10 = arith.extui %9 : i1 to i32
    %c0_i32_8 = arith.constant 0 : i32
    %11 = arith.cmpi ne, %10, %c0_i32_8 : i32
    scf.if %11 {
      %c0_9 = arith.constant 0 : index
      %c0_10 = arith.constant 0 : index
      %12 = vector.load %arg8[%c0_9, %c0_10] : memref<8x128xf32, #tpu.memory_space<vmem>>, vector<8x128xf32>
      %c0_11 = arith.constant 0 : index
      %c0_12 = arith.constant 0 : index
      %13 = vector.load %arg4[%c0_11, %c0_12] : memref<1x128xf32, #tpu.memory_space<vmem>>, vector<1x128xf32>
      %14 = vector.broadcast %13 : vector<1x128xf32> to vector<8x128xf32>
      %15 = arith.addf %12, %14 : vector<8x128xf32>
      %cst_13 = arith.constant 0.000000e+00 : f32
      %16 = vector.broadcast %cst_13 : f32 to vector<8x128xf32>
      %17 = arith.maximumf %15, %16 : vector<8x128xf32>
      %18 = arith.truncf %17 : vector<8x128xf32> to vector<8x128xbf16>
      %c0_14 = arith.constant 0 : index
      %c0_15 = arith.constant 0 : index
      %19 = vector.load %arg5[%c0_14, %c0_15] : memref<128x128xbf16, #tpu.memory_space<vmem>>, vector<128x128xbf16>
      %cst_16 = arith.constant dense<0.000000e+00> : vector<8x128xf32>
      %20 = tpu.matmul %18, %19, %cst_16 {dimension_numbers = #tpu.dot_dimension_numbers<[1], [0], [0], [1], [0, 0, 1, 1], [], []>} : vector<8x128xbf16>, vector<128x128xbf16>, vector<8x128xf32> -> vector<8x128xf32>
      %c0_17 = arith.constant 0 : index
      %c0_18 = arith.constant 0 : index
      %21 = vector.load %arg6[%c0_17, %c0_18] : memref<1x128xf32, #tpu.memory_space<vmem>>, vector<1x128xf32>
      %22 = vector.broadcast %21 : vector<1x128xf32> to vector<8x128xf32>
      %23 = arith.addf %20, %22 : vector<8x128xf32>
      %c0_19 = arith.constant 0 : index
      %c0_20 = arith.constant 0 : index
      %24 = vector.load %arg7[%c0_19, %c0_20] : memref<8x128xf32, #tpu.memory_space<vmem>>, vector<8x128xf32>
      tpu.vector_store %arg7[%c0_19, %c0_20], %23 {strides = array<i32>} : memref<8x128xf32, #tpu.memory_space<vmem>>, vector<8x128xf32>,
    } else {
    }
    return
  }
  func.func @transform_0(%arg0: i32, %arg1: i32) -> (i32, i32) {
    %c0_i32 = arith.constant 0 : i32
    return %arg0, %arg1 : i32, i32
  }
  func.func @transform_1(%arg0: i32, %arg1: i32) -> (i32, i32) {
    %c0_i32 = arith.constant 0 : i32
    %c0_i32_0 = arith.constant 0 : i32
    return %arg1, %c0_i32 : i32, i32
  }
  func.func @transform_2(%arg0: i32, %arg1: i32) -> (i32, i32) {
    %c0_i32 = arith.constant 0 : i32
    %c0_i32_0 = arith.constant 0 : i32
    %c0_i32_1 = arith.constant 0 : i32
    return %c0_i32, %c0_i32_0 : i32, i32
  }
  func.func @transform_3(%arg0: i32, %arg1: i32) -> (i32, i32) {
    %c0_i32 = arith.constant 0 : i32
    %c0_i32_0 = arith.constant 0 : i32
    %c0_i32_1 = arith.constant 0 : i32
    return %c0_i32, %c0_i32_0 : i32, i32
  }
  func.func @transform_4(%arg0: i32, %arg1: i32) -> (i32, i32) {
    %c0_i32 = arith.constant 0 : i32
    %c0_i32_0 = arith.constant 0 : i32
    %c0_i32_1 = arith.constant 0 : i32
    return %c0_i32, %c0_i32_0 : i32, i32
  }
  func.func @transform_5(%arg0: i32, %arg1: i32) -> (i32, i32) {
    %c0_i32 = arith.constant 0 : i32
    %c0_i32_0 = arith.constant 0 : i32
    return %arg0, %c0_i32 : i32, i32
  }
}

</mosaic_0001>

<bundles_post_ra>
// kernel: multimodal_forward.1
= control target key start
LH: loop header
LB: loop body
LE: loop exit
PB: predicated region body
PF: predicated region fallthrough
CT: control target
= control target key end

     0   :  { %s1071_s18 = smov 0   ;;  %s1073_s19 = smov 0   ;;  %s1181_s0 = inlined_call_operand.vmem [shape: bf16[8,1536], index: 0, kind: input, shape index: {}]   ;;  %s1182_s1 = inlined_call_operand.vmem [shape: bf16[1536,128], index: 1, kind: input, shape index: {}]   ;;  %s1183_s2 = inlined_call_operand.vmem [shape: f32[1,128], index: 2, kind: input, shape index: {}]   ;;  %s1184_s3 = inlined_call_operand.vmem [shape: bf16[128,128], index: 3, kind: input, shape index: {}]   ;;  %s1185_s4 = inlined_call_operand.vmem [shape: f32[1,128], index: 4, kind: input, shape index: {}]   ;;  %s1186_s5 = inlined_call_operand.vmem [shape: f32[8,128], index: 5, kind: output, shape index: {}]  }
   0x1   :  { %s1075_s20 = smov 0  }
   0x2 LB: > { %s24_s21 = sadd.s32 1, %s1034_s19  ;;  %p779_p0 = scmp.ge.s32.totalorder %s1038_s20, 1  ;;  %s1038_s20 = sphi %s1075_s20, %s15_s20   ;;  %s1034_s19 = sphi %s1073_s19, %s1188_s19   ;;  %s1030_s18 = sphi %s1071_s18, %s1187_s18  }
   0x3   : > { %p25_p1 = scmp.ge.s32.totalorder %s24_s21, 3  ;;  %p217_p2 = scmp.lt.s32.totalorder %s1038_s20, 4 }
   0x5   : > { %s1190_s21 = smov (%p25_p1, %s24_s21), 0  ;;  %p218_p3 = pnand %p779_p0, %p217_p2 }
   0x6   : > { %s780_s22 = sshll.u32 (!%p218_p3), %s1030_s18, 2  ;;  %s782_s23 = sshll.u32 (!%p218_p3), %s1030_s18, 6 }
   0x7   : > { %221 = sbr.rel (%p218_p3) target bundleno = 363 (0x16b), region = 40  ;;  %p256_p4 = scmp.lt.s32.totalorder (!%p218_p3), %s780_s22, 11 }
   0x8   : > { %p264_p5 = scmp.lt.s32.totalorder (!%p218_p3), %s782_s23, 191  ;;  %p784_p6 = scmp.ne.s32.totalorder (!%p218_p3), %s1030_s18, 0 }
   0xc   : > { %s1192_s22 = smov (!%p256_p4, %s780_s22), 11  ;;  %s1194_s23 = smov (!%p264_p5, %s782_s23), 191 }
   0xd   : > { %s781_s24 = sshll.u32 %s1192_s22, 2  ;;  %s783_s28 = sshll.u32 %s1194_s23, 2 }
   0xe   : > { %s1096_s27 = scalar_lea.vmem %s1181_s0, %s781_s24  ;;  %s1101_s6 = scalar_lea.vmem %s1182_s1, %s783_s28 }
   0xf   : > { %276 = sbr.rel (%p784_p6) target bundleno = 22 (0x16), region = 44 }
  0x14   : > { %v1040_v0 = vmov 0.0  }
  0x15   : > { %277 = vst [vmem:[#allocation2] sm:$0xff] %v1040_v0 }
  0x16 PF: > { %v956_v1 = vld [vmem:[%s1101_s6 + $0x38] sm:$0xff]  ;;  %v955_v5 = vld [vmem:[%s1101_s6 + $0x30] sm:$0xff]  ;;  %v954_v9 = vld [vmem:[%s1101_s6 + $0x28] sm:$0xff]  ;;  %p913_p7 = scmp.ne.s32.totalorder %s1030_s18, 2 }
  0x17   : > { %v964_v2 = vld [vmem:[%s1101_s6 + $0x78] sm:$0xff]  ;;  %551 = vmatpush.bf16.msra.mxu0 %v956_v1  ;;  %v963_v6 = vld [vmem:[%s1101_s6 + $0x70] sm:$0xff]  ;;  %v962_v10 = vld [vmem:[%s1101_s6 + $0x68] sm:$0xff] }
  0x18   : > { %v972_v3 = vld [vmem:[%s1101_s6 + $0xb8] sm:$0xff]  ;;  %564 = vmatpush.bf16.msra.mxu1 %v964_v2  ;;  %v971_v7 = vld [vmem:[%s1101_s6 + $0xb0] sm:$0xff]  ;;  %v970_v11 = vld [vmem:[%s1101_s6 + $0xa8] sm:$0xff] }
  0x19   : > { %v980_v4 = vld [vmem:[%s1101_s6 + $0xf8] sm:$0xff]  ;;  %577 = vmatpush.bf16.msra.mxu2 %v972_v3  ;;  %v979_v8 = vld [vmem:[%s1101_s6 + $0xf0] sm:$0xff]  ;;  %v978_v12 = vld [vmem:[%s1101_s6 + $0xe8] sm:$0xff] }
  0x1a   : > { %590 = vmatpush.bf16.msra.mxu3 %v980_v4  ;;  %v953_v13 = vld [vmem:[%s1101_s6 + $0x20] sm:$0xff]  ;;  %v952_v17 = vld [vmem:[%s1101_s6 + $0x18] sm:$0xff]  ;;  %v951_v21 = vld [vmem:[%s1101_s6 + $0x10] sm:$0xff] }
  0x1b   : > { %552 = vmatpush.bf16.msra.mxu0 %v955_v5  ;;  %v961_v14 = vld [vmem:[%s1101_s6 + $0x60] sm:$0xff]  ;;  %v960_v18 = vld [vmem:[%s1101_s6 + $0x58] sm:$0xff]  ;;  %v959_v22 = vld [vmem:[%s1101_s6 + $0x50] sm:$0xff] }
  0x1c   : > { %565 = vmatpush.bf16.msra.mxu1 %v963_v6  ;;  %v969_v15 = vld [vmem:[%s1101_s6 + $0xa0] sm:$0xff]  ;;  %v968_v19 = vld [vmem:[%s1101_s6 + $0x98] sm:$0xff]  ;;  %v967_v23 = vld [vmem:[%s1101_s6 + $0x90] sm:$0xff] }
  0x1d   : > { %578 = vmatpush.bf16.msra.mxu2 %v971_v7  ;;  %v977_v16 = vld [vmem:[%s1101_s6 + $0xe0] sm:$0xff]  ;;  %v976_v20 = vld [vmem:[%s1101_s6 + $0xd8] sm:$0xff]  ;;  %v975_v24 = vld [vmem:[%s1101_s6 + $0xd0] sm:$0xff] }
  0x1e   : > { %591 = vmatpush.bf16.msra.mxu3 %v979_v8  ;;  %v950_v25 = vld [vmem:[%s1101_s6 + $0x8] sm:$0xff]  ;;  %v279_v27 = vld [vmem:[%s1096_s27] sm:$0xff] }
  0x1f   : > { %553 = vmatpush.bf16.msra.mxu0 %v954_v9  ;;  %v958_v26 = vld [vmem:[%s1101_s6 + $0x48] sm:$0xff]  ;;  %v347_v31 = vunpack.c.l.b16 %v279_v27  ;;  %v348_v32 = vunpack.c.h.b16 %v279_v27  ;;  %v949_v33 = vld [vmem:[%s1101_s6] sm:$0xff] }
  0x20   : > { %566 = vmatpush.bf16.msra.mxu1 %v962_v10  ;;  %v966_v28 = vld [vmem:[%s1101_s6 + $0x88] sm:$0xff]  ;;  %v957_v34 = vld [vmem:[%s1101_s6 + $0x40] sm:$0xff] }
  0x21   : > { %579 = vmatpush.bf16.msra.mxu2 %v970_v11  ;;  %v974_v29 = vld [vmem:[%s1101_s6 + $0xc8] sm:$0xff]  ;;  %v965_v37 = vld [vmem:[%s1101_s6 + $0x80] sm:$0xff]  ;;  %v351_v39 = vpack.c.b16 %v347_v31, %v347_v31  ;;  %v352_v40 = vpack.c.b16 %v348_v32, %v348_v32 }
  0x22   : > { %592 = vmatpush.bf16.msra.mxu3 %v978_v12  ;;  %v280_v30 = vld [vmem:[%s1096_s27 + $0x8] sm:$0xff]  ;;  %v973_v38 = vld [vmem:[%s1101_s6 + $0xc0] sm:$0xff] }
  0x23   : > { %554 = vmatpush.bf16.msra.mxu0 %v953_v13  ;;  %v349_v35 = vunpack.c.l.b16 %v280_v30  ;;  %v350_v36 = vunpack.c.h.b16 %v280_v30  ;;  %v278_v51 = vld [vmem:[#allocation2] sm:$0xff] }
  0x24   : > { %567 = vmatpush.bf16.msra.mxu1 %v961_v14 }
  0x25   : > { %580 = vmatpush.bf16.msra.mxu2 %v969_v15  ;;  %v353_v41 = vpack.c.b16 %v349_v35, %v349_v35  ;;  %v354_v42 = vpack.c.b16 %v350_v36, %v350_v36 }
  0x26   : > { %593 = vmatpush.bf16.msra.mxu3 %v977_v16 }
  0x27   : > { %555 = vmatpush.bf16.msra.mxu0 %v952_v17 }
  0x28   : > { %568 = vmatpush.bf16.msra.mxu1 %v960_v18 }
  0x29   : > { %581 = vmatpush.bf16.msra.mxu2 %v968_v19 }
  0x2a   : > { %594 = vmatpush.bf16.msra.mxu3 %v976_v20 }
  0x2b   : > { %556 = vmatpush.bf16.msra.mxu0 %v951_v21 }
  0x2c   : > { %569 = vmatpush.bf16.msra.mxu1 %v959_v22 }
  0x2d   : > { %582 = vmatpush.bf16.msra.mxu2 %v967_v23 }
  0x2e   : > { %595 = vmatpush.bf16.msra.mxu3 %v975_v24 }
  0x2f   : > { %557 = vmatpush.bf16.msra.mxu0 %v950_v25 }
  0x30   : > { %570 = vmatpush.bf16.msra.mxu1 %v958_v26 }
  0x31   : > { %583 = vmatpush.bf16.msra.mxu2 %v966_v28 }
  0x32   : > { %596 = vmatpush.bf16.msra.mxu3 %v974_v29 }
  0x33   : > { %558 = vmatpush.bf16.msra.mxu0 %v949_v33 }
  0x34   : > { %571 = vmatpush.bf16.msra.mxu1 %v957_v34 }
  0x35   : > { %584 = vmatpush.bf16.msra.mxu2 %v965_v37 }
  0x36   : > { %597 = vmatpush.bf16.msra.mxu3 %v973_v38  ;;  %559 = vmatmul.bf16.vlgmr.msra.gmra.mxu0 %v351_v39 }
  0x37   : > { %572 = vmatmul.bf16.vlgmr.msra.gmra.mxu1 %v352_v40 }
  0x38   : > { %585 = vmatmul.bf16.vlgmr.msra.gmra.mxu2 %v353_v41 }
  0x39   : > { %598 = vmatmul.bf16.vlgmr.msra.gmra.mxu3 %v354_v42 }
  0xb3   : > { %v560_v43 = vpop.f32.mrf.mxu0 }
  0xb4   : > { %v573_v44 = vpop.f32.mrf.mxu1 }
  0xb5   : > { %v574_v45 = vadd.f32 %v573_v44, %v560_v43 }
  0xbb   : > { %v586_v46 = vpop.f32.mrf.mxu2  ;;  %v562_v49 = vpop.f32.mrf.mxu0 }
  0xbc   : > { %v599_v47 = vpop.f32.mrf.mxu3  ;;  %v587_v48 = vadd.f32 %v586_v46, %v574_v45  ;;  %v575_v50 = vpop.f32.mrf.mxu1 }
  0xbe   : > { %v600_v52 = vadd.f32 %v599_v47, %v587_v48 }
  0xc0   : > { %v603_v53 = vadd.f32 %v600_v52, %v278_v51  ;;  %608 = sbr.rel (%p913_p7) target bundleno = 363 (0x16b), region = 48 }
  0xc2   : > { %604 = vst [vmem:[#allocation2] sm:$0xff] %v603_v53 }
  0xc3   : > { %v588_v54 = vpop.f32.mrf.mxu2 }
  0xc4   : > { %v601_v55 = vpop.f32.mrf.mxu3 }
  0xc5   : > { %v988_v56 = vld [vmem:[%s1184_s3 + $0x38] sm:$0xff]  ;;  %v987_v57 = vld [vmem:[%s1184_s3 + $0x30] sm:$0xff]  ;;  %v986_v58 = vld [vmem:[%s1184_s3 + $0x28] sm:$0xff] }
  0xc6   : > { %685 = vmatpush.bf16.msra.mxu0 %v988_v56  ;;  %v985_v59 = vld [vmem:[%s1184_s3 + $0x20] sm:$0xff]  ;;  %v984_v60 = vld [vmem:[%s1184_s3 + $0x18] sm:$0xff]  ;;  %v983_v62 = vld [vmem:[%s1184_s3 + $0x10] sm:$0xff] }
  0xc7   : > { %v1014_v61 = vld [vmem:[%s1183_s2] ss:$0 sm:$0xff]  ;;  %v982_v1 = vld [vmem:[%s1184_s3 + $0x8] sm:$0xff] }
  0xc8   : > { %v981_v3 = vld [vmem:[%s1184_s3] sm:$0xff] }
  0xc9   : > { %v609_v63 = vld [vmem:[#allocation2] sm:$0xff] }
  0xca   : > { %686 = vmatpush.bf16.msra.mxu0 %v987_v57  ;;  %v614_v0 = vadd.f32 %v1014_v61, %v609_v63  ;;  %v1015_v5 = vld [vmem:[%s1185_s4] ss:$0 sm:$0xff] }
  0xcc   : > { %v615_v2 = vmax.f32 %v614_v0, 0.0 }
  0xce   : > { %687 = vmatpush.bf16.msra.mxu0 %v986_v58  ;;  %v616_v4 = vpack.c.bf16 %v615_v2, %v615_v2 }
  0xd2   : > { %688 = vmatpush.bf16.msra.mxu0 %v985_v59 }
  0xd6   : > { %689 = vmatpush.bf16.msra.mxu0 %v984_v60 }
  0xda   : > { %690 = vmatpush.bf16.msra.mxu0 %v983_v62 }
  0xde   : > { %691 = vmatpush.bf16.msra.mxu0 %v982_v1 }
  0xe2   : > { %692 = vmatpush.bf16.msra.mxu0 %v981_v3 }
  0xe5   : > { %693 = vmatmul.bf16.vlgmr.msra.gmra.mxu0 %v616_v4 }
 0x162   : > { %v694_v6 = vpop.f32.mrf.mxu0 }
 0x163   : > { %v695_v7 = vadd.f32 %v1015_v5, %v694_v6 }
 0x165   : > { %698 = vst [vmem:[%s1186_s5] sm:$0xff] %v695_v7 }
 0x16a   : > { %v696_v8 = vpop.f32.mrf.mxu0 }
 0x16b PF: > { %s15_s20 = sadd.s32 1, %s1038_s20   ;;  %s1187_s18 = smov %s1034_s19 }
 0x16c   : > { %p12_p8 = scmp.ge.s32.totalorder %s15_s20, 5   ;;  %s1188_s19 = smov %s1190_s21 }
 0x16e   :  { %14 = sbr.rel (!%p12_p8) target bundleno = 2 (0x2), region = 81 }

</bundles_post_ra>
